<compile_context>
chip_gen: v6e
topology: v6e:2x2x1
jax: 0.10.0
libtpu: 0.0.40
codegen_flags: <defaults>
</compile_context>

<pallas_src>
import functools

import jax
import jax.numpy as jnp
from jax.experimental import pallas as pl
from jax.experimental.pallas import tpu as pltpu


def _pinn_mlp_kernel(x_ref,
                     w0_ref, b0_ref,
                     w1_ref, b1_ref,
                     w2_ref, b2_ref,
                     w3_ref, b3_ref,
                     wo_ref, bo_ref,
                     o_ref,
                     *, use_bf16_matmul: bool):
    # x_ref: (2, TB) tile — row 0 = x-coordinate, row 1 = t, batch on lanes.
    x = x_ref[...]
    w0 = w0_ref[...]                           # (H0, 2) f32

    # ---- input layer: K=2 contraction done on the VPU (MXU would be ~empty)
    h = jnp.tanh(w0[:, 0:1] * x[0:1, :]        # (H0,1)*(1,TB) -> (H0,TB)
                 + w0[:, 1:2] * x[1:2, :]
                 + b0_ref[...])                # (H0,1) broadcast over lanes

    def dense_tanh(w_ref, b_ref, h):
        # Weights were pre-cast to bf16 in the wrapper when use_bf16_matmul;
        # only the activation tile needs a per-layer cast here.
        w = w_ref[...]
        rhs = h.astype(jnp.bfloat16) if use_bf16_matmul else h
        z = jnp.dot(w, rhs, preferred_element_type=jnp.float32)
        return jnp.tanh(z + b_ref[...])        # bias add + tanh in f32

    # ---- hidden layers: (H,H) @ (H,TB) — MXU lanes filled by the batch tile
    h = dense_tanh(w1_ref, b1_ref, h)
    h = dense_tanh(w2_ref, b2_ref, h)
    h = dense_tanh(w3_ref, b3_ref, h)

    # ---- output layer (no activation): (1,H) @ (H,TB) -> lane-dense (1,TB)
    wo = wo_ref[...]
    ho = h.astype(jnp.bfloat16) if use_bf16_matmul else h
    out = jnp.dot(wo, ho, preferred_element_type=jnp.float32) + bo_ref[...]
    o_ref[...] = out.astype(o_ref.dtype)


def _round_up(v: int, m: int) -> int:
    return ((v + m - 1) // m) * m


@functools.partial(jax.jit,
                   static_argnames=("max_batch_tile", "target_steps",
                                    "use_bf16_matmul"))
def pinn_forward(x, params, *, max_batch_tile=4096, target_steps=2,
                 use_bf16_matmul=True):
    """Forward pass of PINN_pt: [B, 2] -> [B, 1].

    params: dict with keys w0,b0, w1,b1, w2,b2, w3,b3, wo,bo.
            Weights in PyTorch nn.Linear layout [out_features, in_features],
            biases as [out_features, 1].
    """
    B, F = x.shape
    assert F == 2

    # B-adaptive tiling: big tiles to amortize per-step overhead, but sized to
    # the batch so padded lanes stay small, and >=target_steps grid steps at
    # moderate B so v7x's two TensorCores both get work.
    batch_tile = min(max_batch_tile,
                     max(128, _round_up(-(-B // target_steps), 128)))
    n_tiles = pl.cdiv(B, batch_tile)
    Bp = n_tiles * batch_tile

    xt = x.T.astype(jnp.float32)               # (2, B): batch on lanes
    if Bp != B:
        xt = jnp.pad(xt, ((0, 0), (0, Bp - B)))

    # Pre-cast the MXU-bound weight matrices once in the wrapper (not per grid
    # step inside the kernel).  Input-layer weight and all biases stay f32
    # (VPU FMA path / f32 bias-add+tanh, which is also right for v5e).
    mm_dtype = jnp.bfloat16 if use_bf16_matmul else jnp.float32
    weight_args = (
        params["w0"].astype(jnp.float32), params["b0"].astype(jnp.float32),
        params["w1"].astype(mm_dtype),    params["b1"].astype(jnp.float32),
        params["w2"].astype(mm_dtype),    params["b2"].astype(jnp.float32),
        params["w3"].astype(mm_dtype),    params["b3"].astype(jnp.float32),
        params["wo"].astype(mm_dtype),    params["bo"].astype(jnp.float32),
    )
    # Full-array blocks with a constant index map -> weights stay resident in
    # VMEM across all grid steps (no per-step re-DMA of the ~15-30 KB of params).
    weight_specs = [pl.BlockSpec(w.shape, lambda *_: (0, 0))
                    for w in weight_args]

    out_t = pl.pallas_call(
        functools.partial(_pinn_mlp_kernel, use_bf16_matmul=use_bf16_matmul),
        out_shape=jax.ShapeDtypeStruct((1, Bp), jnp.float32),
        grid_spec=pltpu.PrefetchScalarGridSpec(
            num_scalar_prefetch=0,
            grid=(n_tiles,),
            in_specs=[pl.BlockSpec((2, batch_tile), lambda i: (0, i))]
                     + weight_specs,
            out_specs=pl.BlockSpec((1, batch_tile), lambda i: (0, i)),
        ),
        compiler_params=pltpu.CompilerParams(
            dimension_semantics=("parallel",)),
    )(xt, *weight_args)

    return out_t[0, :B][:, None]               # (B, 1)


def init_pinn_params(key, hidden_layers=(50, 50, 50, 50)):
    """Xavier-normal weights (as in nn.init.xavier_normal_), zero biases.

    Weights kept in PyTorch layout [out_features, in_features]; biases [out, 1].
    """
    dims = [2] + list(hidden_layers) + [1]
    names = ["w0", "w1", "w2", "w3", "wo"]
    bnames = ["b0", "b1", "b2", "b3", "bo"]
    params = {}
    keys = jax.random.split(key, len(names))
    for k, name, bname, fan_in, fan_out in zip(keys, names, bnames,
                                               dims[:-1], dims[1:]):
        std = (2.0 / (fan_in + fan_out)) ** 0.5
        params[name] = std * jax.random.normal(k, (fan_out, fan_in), jnp.float32)
        params[bname] = jnp.zeros((fan_out, 1), jnp.float32)
    return params


def pinn_forward_ref(x, params):
    """Pure-JAX reference of the same forward pass (for validation)."""
    h = jnp.tanh(x @ params["w0"].T + params["b0"][:, 0])
    h = jnp.tanh(h @ params["w1"].T + params["b1"][:, 0])
    h = jnp.tanh(h @ params["w2"].T + params["b2"][:, 0])
    h = jnp.tanh(h @ params["w3"].T + params["b3"][:, 0])
    return h @ params["wo"].T + params["bo"][:, 0]


if __name__ == "__main__":
    key = jax.random.PRNGKey(0)
    pkey, xkey = jax.random.split(key)

    params = init_pinn_params(pkey, hidden_layers=(50, 50, 50, 50))

    # Batch of (x, t) collocation points, shape [B, 2]. B is deliberately not a
    # multiple of 128 to exercise the pad/slice path; the adaptive tiling gives
    # batch_tile=512, 2 grid steps (both v7x TensorCores busy).
    B = 1000
    x = jax.random.uniform(xkey, (B, 2), jnp.float32, minval=-1.0, maxval=1.0)

    ref = pinn_forward_ref(x, params)

    # Default path: bf16 MXU operands with f32 accumulate / f32 tanh
    # (v6e/v7x fast path; on v5e the MXU is bf16-native too).
    out = jax.block_until_ready(pinn_forward(x, params))
    assert out.shape == (B, 1)
    assert jnp.allclose(out, ref, atol=5e-2, rtol=5e-2), "bf16 path mismatch"

    # Exact-parity f32 path (for PDE-residual / nested-autodiff work where
    # mantissa loss matters).
    out_f32 = jax.block_until_ready(
        pinn_forward(x, params, use_bf16_matmul=False))
    assert jnp.allclose(out_f32, ref, atol=1e-5, rtol=1e-5), \
        "f32 path mismatch vs reference"

    # TODO(synk): compute_pde_residual / compute_ic_residual need nested autodiff
    # through the network; expose via jax.grad over pinn_forward_ref rather than
    # inside the Pallas kernel.  Adaptive/sigmoid/relu activation variants of the
    # module are not wired up (default tanh, adaptive=False is implemented).
    print("KERNEL_OK")
</pallas_src>

<mosaic_0001>
module attributes {stable_mosaic.version = 11 : i64} {
  func.func @_pinn_mlp_kernel(%arg0: i32, %arg1: memref<2x512xf32, #tpu.memory_space<vmem>>, %arg2: memref<50x2xf32, #tpu.memory_space<vmem>>, %arg3: memref<50x1xf32, #tpu.memory_space<vmem>>, %arg4: memref<50x50xbf16, #tpu.memory_space<vmem>>, %arg5: memref<50x1xf32, #tpu.memory_space<vmem>>, %arg6: memref<50x50xbf16, #tpu.memory_space<vmem>>, %arg7: memref<50x1xf32, #tpu.memory_space<vmem>>, %arg8: memref<50x50xbf16, #tpu.memory_space<vmem>>, %arg9: memref<50x1xf32, #tpu.memory_space<vmem>>, %arg10: memref<1x50xbf16, #tpu.memory_space<vmem>>, %arg11: memref<1x1xf32, #tpu.memory_space<vmem>>, %arg12: memref<1x512xf32, #tpu.memory_space<vmem>>) attributes {dimension_semantics = [#tpu.dimension_semantics<parallel>], iteration_bounds = array<i64: 2>, scalar_prefetch = 0 : i64, scratch_operands = 0 : i64, tpu.core_type = #tpu.core_type<tc>, window_params = [{transform_indices = @transform_0, window_bounds = array<i64: 2, 512>}, {pipeline_mode = #tpu.pipeline_mode<synchronous>, transform_indices = @transform_1, window_bounds = array<i64: 50, 2>}, {pipeline_mode = #tpu.pipeline_mode<synchronous>, transform_indices = @transform_2, window_bounds = array<i64: 50, 1>}, {pipeline_mode = #tpu.pipeline_mode<synchronous>, transform_indices = @transform_3, window_bounds = array<i64: 50, 50>}, {pipeline_mode = #tpu.pipeline_mode<synchronous>, transform_indices = @transform_4, window_bounds = array<i64: 50, 1>}, {pipeline_mode = #tpu.pipeline_mode<synchronous>, transform_indices = @transform_5, window_bounds = array<i64: 50, 50>}, {pipeline_mode = #tpu.pipeline_mode<synchronous>, transform_indices = @transform_6, window_bounds = array<i64: 50, 1>}, {pipeline_mode = #tpu.pipeline_mode<synchronous>, transform_indices = @transform_7, window_bounds = array<i64: 50, 50>}, {pipeline_mode = #tpu.pipeline_mode<synchronous>, transform_indices = @transform_8, window_bounds = array<i64: 50, 1>}, {pipeline_mode = #tpu.pipeline_mode<synchronous>, transform_indices = @transform_9, window_bounds = array<i64: 1, 50>}, {pipeline_mode = #tpu.pipeline_mode<synchronous>, transform_indices = @transform_10, window_bounds = array<i64: 1, 1>}, {transform_indices = @transform_11, window_bounds = array<i64: 1, 512>}]} {
    %c0 = arith.constant 0 : index
    %c0_0 = arith.constant 0 : index
    %0 = vector.load %arg1[%c0, %c0_0] : memref<2x512xf32, #tpu.memory_space<vmem>>, vector<2x512xf32>
    %c0_1 = arith.constant 0 : index
    %c0_2 = arith.constant 0 : index
    %1 = vector.load %arg2[%c0_1, %c0_2] : memref<50x2xf32, #tpu.memory_space<vmem>>, vector<50x2xf32>
    %2 = vector.extract_strided_slice %1 {offsets = [0, 0], sizes = [50, 1], strides = [1, 1]} : vector<50x2xf32> to vector<50x1xf32>
    %3 = vector.extract_strided_slice %0 {offsets = [0, 0], sizes = [1, 512], strides = [1, 1]} : vector<2x512xf32> to vector<1x512xf32>
    %4 = vector.broadcast %2 : vector<50x1xf32> to vector<50x512xf32>
    %5 = vector.broadcast %3 : vector<1x512xf32> to vector<50x512xf32>
    %6 = arith.mulf %4, %5 : vector<50x512xf32>
    %7 = vector.extract_strided_slice %1 {offsets = [0, 1], sizes = [50, 1], strides = [1, 1]} : vector<50x2xf32> to vector<50x1xf32>
    %8 = vector.extract_strided_slice %0 {offsets = [1, 0], sizes = [1, 512], strides = [1, 1]} : vector<2x512xf32> to vector<1x512xf32>
    %9 = vector.broadcast %7 : vector<50x1xf32> to vector<50x512xf32>
    %10 = vector.broadcast %8 : vector<1x512xf32> to vector<50x512xf32>
    %11 = arith.mulf %9, %10 : vector<50x512xf32>
    %12 = arith.addf %6, %11 : vector<50x512xf32>
    %c0_3 = arith.constant 0 : index
    %c0_4 = arith.constant 0 : index
    %13 = vector.load %arg3[%c0_3, %c0_4] : memref<50x1xf32, #tpu.memory_space<vmem>>, vector<50x1xf32>
    %14 = vector.broadcast %13 : vector<50x1xf32> to vector<50x512xf32>
    %15 = arith.addf %12, %14 : vector<50x512xf32>
    %16 = math.tanh %15 : vector<50x512xf32>
    %c0_5 = arith.constant 0 : index
    %c0_6 = arith.constant 0 : index
    %17 = vector.load %arg4[%c0_5, %c0_6] : memref<50x50xbf16, #tpu.memory_space<vmem>>, vector<50x50xbf16>
    %18 = arith.truncf %16 : vector<50x512xf32> to vector<50x512xbf16>
    %cst = arith.constant dense<0.000000e+00> : vector<50x512xf32>
    %19 = tpu.matmul %17, %18, %cst {dimension_numbers = #tpu.dot_dimension_numbers<[1], [0], [0], [1], [0, 0, 1, 1], [], []>} : vector<50x50xbf16>, vector<50x512xbf16>, vector<50x512xf32> -> vector<50x512xf32>
    %c0_7 = arith.constant 0 : index
    %c0_8 = arith.constant 0 : index
    %20 = vector.load %arg5[%c0_7, %c0_8] : memref<50x1xf32, #tpu.memory_space<vmem>>, vector<50x1xf32>
    %21 = vector.broadcast %20 : vector<50x1xf32> to vector<50x512xf32>
    %22 = arith.addf %19, %21 : vector<50x512xf32>
    %23 = math.tanh %22 : vector<50x512xf32>
    %c0_9 = arith.constant 0 : index
    %c0_10 = arith.constant 0 : index
    %24 = vector.load %arg6[%c0_9, %c0_10] : memref<50x50xbf16, #tpu.memory_space<vmem>>, vector<50x50xbf16>
    %25 = arith.truncf %23 : vector<50x512xf32> to vector<50x512xbf16>
    %cst_11 = arith.constant dense<0.000000e+00> : vector<50x512xf32>
    %26 = tpu.matmul %24, %25, %cst_11 {dimension_numbers = #tpu.dot_dimension_numbers<[1], [0], [0], [1], [0, 0, 1, 1], [], []>} : vector<50x50xbf16>, vector<50x512xbf16>, vector<50x512xf32> -> vector<50x512xf32>
    %c0_12 = arith.constant 0 : index
    %c0_13 = arith.constant 0 : index
    %27 = vector.load %arg7[%c0_12, %c0_13] : memref<50x1xf32, #tpu.memory_space<vmem>>, vector<50x1xf32>
    %28 = vector.broadcast %27 : vector<50x1xf32> to vector<50x512xf32>
    %29 = arith.addf %26, %28 : vector<50x512xf32>
    %30 = math.tanh %29 : vector<50x512xf32>
    %c0_14 = arith.constant 0 : index
    %c0_15 = arith.constant 0 : index
    %31 = vector.load %arg8[%c0_14, %c0_15] : memref<50x50xbf16, #tpu.memory_space<vmem>>, vector<50x50xbf16>
    %32 = arith.truncf %30 : vector<50x512xf32> to vector<50x512xbf16>
    %cst_16 = arith.constant dense<0.000000e+00> : vector<50x512xf32>
    %33 = tpu.matmul %31, %32, %cst_16 {dimension_numbers = #tpu.dot_dimension_numbers<[1], [0], [0], [1], [0, 0, 1, 1], [], []>} : vector<50x50xbf16>, vector<50x512xbf16>, vector<50x512xf32> -> vector<50x512xf32>
    %c0_17 = arith.constant 0 : index
    %c0_18 = arith.constant 0 : index
    %34 = vector.load %arg9[%c0_17, %c0_18] : memref<50x1xf32, #tpu.memory_space<vmem>>, vector<50x1xf32>
    %35 = vector.broadcast %34 : vector<50x1xf32> to vector<50x512xf32>
    %36 = arith.addf %33, %35 : vector<50x512xf32>
    %37 = math.tanh %36 : vector<50x512xf32>
    %c0_19 = arith.constant 0 : index
    %c0_20 = arith.constant 0 : index
    %38 = vector.load %arg10[%c0_19, %c0_20] : memref<1x50xbf16, #tpu.memory_space<vmem>>, vector<1x50xbf16>
    %39 = arith.truncf %37 : vector<50x512xf32> to vector<50x512xbf16>
    %cst_21 = arith.constant dense<0.000000e+00> : vector<1x512xf32>
    %40 = tpu.matmul %38, %39, %cst_21 {dimension_numbers = #tpu.dot_dimension_numbers<[1], [0], [0], [1], [0, 0, 1, 1], [], []>} : vector<1x50xbf16>, vector<50x512xbf16>, vector<1x512xf32> -> vector<1x512xf32>
    %c0_22 = arith.constant 0 : index
    %c0_23 = arith.constant 0 : index
    %41 = vector.load %arg11[%c0_22, %c0_23] : memref<1x1xf32, #tpu.memory_space<vmem>>, vector<1x1xf32>
    %42 = vector.broadcast %41 : vector<1x1xf32> to vector<1x512xf32>
    %43 = arith.addf %40, %42 : vector<1x512xf32>
    %c0_24 = arith.constant 0 : index
    %c0_25 = arith.constant 0 : index
    %44 = vector.load %arg12[%c0_24, %c0_25] : memref<1x512xf32, #tpu.memory_space<vmem>>, vector<1x512xf32>
    tpu.vector_store %arg12[%c0_24, %c0_25], %43 {strides = array<i32>} : memref<1x512xf32, #tpu.memory_space<vmem>>, vector<1x512xf32>,
    return
  }
  func.func @transform_0(%arg0: i32) -> (i32, i32) {
    %c0_i32 = arith.constant 0 : i32
    %c0_i32_0 = arith.constant 0 : i32
    return %c0_i32, %arg0 : i32, i32
  }
  func.func @transform_1(%arg0: i32) -> (i32, i32) {
    %c0_i32 = arith.constant 0 : i32
    %c0_i32_0 = arith.constant 0 : i32
    %c0_i32_1 = arith.constant 0 : i32
    return %c0_i32, %c0_i32_0 : i32, i32
  }
  func.func @transform_2(%arg0: i32) -> (i32, i32) {
    %c0_i32 = arith.constant 0 : i32
    %c0_i32_0 = arith.constant 0 : i32
    %c0_i32_1 = arith.constant 0 : i32
    return %c0_i32, %c0_i32_0 : i32, i32
  }
  func.func @transform_3(%arg0: i32) -> (i32, i32) {
    %c0_i32 = arith.constant 0 : i32
    %c0_i32_0 = arith.constant 0 : i32
    %c0_i32_1 = arith.constant 0 : i32
    return %c0_i32, %c0_i32_0 : i32, i32
  }
  func.func @transform_4(%arg0: i32) -> (i32, i32) {
    %c0_i32 = arith.constant 0 : i32
    %c0_i32_0 = arith.constant 0 : i32
    %c0_i32_1 = arith.constant 0 : i32
    return %c0_i32, %c0_i32_0 : i32, i32
  }
  func.func @transform_5(%arg0: i32) -> (i32, i32) {
    %c0_i32 = arith.constant 0 : i32
    %c0_i32_0 = arith.constant 0 : i32
    %c0_i32_1 = arith.constant 0 : i32
    return %c0_i32, %c0_i32_0 : i32, i32
  }
  func.func @transform_6(%arg0: i32) -> (i32, i32) {
    %c0_i32 = arith.constant 0 : i32
    %c0_i32_0 = arith.constant 0 : i32
    %c0_i32_1 = arith.constant 0 : i32
    return %c0_i32, %c0_i32_0 : i32, i32
  }
  func.func @transform_7(%arg0: i32) -> (i32, i32) {
    %c0_i32 = arith.constant 0 : i32
    %c0_i32_0 = arith.constant 0 : i32
    %c0_i32_1 = arith.constant 0 : i32
    return %c0_i32, %c0_i32_0 : i32, i32
  }
  func.func @transform_8(%arg0: i32) -> (i32, i32) {
    %c0_i32 = arith.constant 0 : i32
    %c0_i32_0 = arith.constant 0 : i32
    %c0_i32_1 = arith.constant 0 : i32
    return %c0_i32, %c0_i32_0 : i32, i32
  }
  func.func @transform_9(%arg0: i32) -> (i32, i32) {
    %c0_i32 = arith.constant 0 : i32
    %c0_i32_0 = arith.constant 0 : i32
    %c0_i32_1 = arith.constant 0 : i32
    return %c0_i32, %c0_i32_0 : i32, i32
  }
  func.func @transform_10(%arg0: i32) -> (i32, i32) {
    %c0_i32 = arith.constant 0 : i32
    %c0_i32_0 = arith.constant 0 : i32
    %c0_i32_1 = arith.constant 0 : i32
    return %c0_i32, %c0_i32_0 : i32, i32
  }
  func.func @transform_11(%arg0: i32) -> (i32, i32) {
    %c0_i32 = arith.constant 0 : i32
    %c0_i32_0 = arith.constant 0 : i32
    return %c0_i32, %arg0 : i32, i32
  }
}

</mosaic_0001>

<bundles_post_ra>
// kernel: pinn_forward.1
= control target key start
LH: loop header
LB: loop body
LE: loop exit
PB: predicated region body
PF: predicated region fallthrough
CT: control target
= control target key end

     0   :  { %s2145_s19 = smov 0   ;;  %s2731_s0 = inlined_call_operand.vmem [shape: f32[2,1024], index: 0, kind: input, shape index: {}]   ;;  %s2732_s1 = inlined_call_operand.vmem [shape: f32[50,2], index: 1, kind: input, shape index: {}]   ;;  %s2733_s2 = inlined_call_operand.vmem [shape: f32[50,1], index: 2, kind: input, shape index: {}]   ;;  %s2734_s3 = inlined_call_operand.vmem [shape: bf16[50,50], index: 3, kind: input, shape index: {}]   ;;  %s2735_s4 = inlined_call_operand.vmem [shape: f32[50,1], index: 4, kind: input, shape index: {}]   ;;  %s2736_s5 = inlined_call_operand.vmem [shape: bf16[50,50], index: 5, kind: input, shape index: {}]   ;;  %s2737_s6 = inlined_call_operand.vmem [shape: f32[50,1], index: 6, kind: input, shape index: {}]   ;;  %s2738_s7 = inlined_call_operand.vmem [shape: bf16[50,50], index: 7, kind: input, shape index: {}]   ;;  %s2739_s8 = inlined_call_operand.vmem [shape: f32[50,1], index: 8, kind: input, shape index: {}]   ;;  %s2740_s9 = inlined_call_operand.vmem [shape: bf16[1,50], index: 9, kind: input, shape index: {}]   ;;  %s2741_s10 = inlined_call_operand.<no memory space> [shape: f32[1,1], index: 10, kind: input, shape index: {}]   ;;  %s2742_s11 = inlined_call_operand.vmem [shape: f32[1,1024], index: 11, kind: output, shape index: {}]  }
   0x1   :  { %v16_v0 = vstv %s2741_s10 }
   0x2   :  { %17 = vst [vmem:[#allocation2] sm:$0x1] %v16_v0 }
   0x3 LB: > { %s1758_s20 = sadd.s32 4294967295, %s2077_s19   ;;  %p1762_p0 = scmp.ge.s32.totalorder %s2077_s19, 1  ;;  %s2077_s19 = sphi %s2145_s19, %s23_s19  }
   0x4   : > { %p340_p1 = scmp.lt.s32.totalorder %s2077_s19, 3 }
   0x6   : > { %p341_p2 = pnand %p1762_p0, %p340_p1 }
   0x7   : > { %s1763_s17 = sshll.u32 (!%p341_p2), %s1758_s20, 2 }
   0x8   : > { %344 = sbr.rel (%p341_p2) target bundleno = 1186 (0x4a2), region = 64  ;;  %p380_p3 = scmp.lt.s32.totalorder (!%p341_p2), %s1763_s17, 7 }
   0xd   : > { %v398_v1 = vld [vmem:[%s2732_s1 + $0x30] sm:$0x3]  ;;  %v396_v2 = vld [vmem:[%s2732_s1 + $0x20] sm:$0xff]  ;;  %v2079_v3 = vmov 0   ;;  %v397_v4 = vld [vmem:[%s2732_s1 + $0x28] sm:$0xff]  ;;  %v2080_v5 = vmov 1   ;;  %v435_v39 = vlaneseq }
   0xe   : > { %1827 = vset.pattern.permute.xlu1 %v2079_v3  ;;  %1825 = vset.pattern.permute.xlu0 %v2079_v3  ;;  %v395_v6 = vld [vmem:[%s2732_s1 + $0x18] sm:$0xff]  ;;  %v625_v7 = vld [vmem:[%s2733_s2 + $0x30] sm:$0x3]  ;;  %v393_v8 = vld [vmem:[%s2732_s1 + $0x8] sm:$0xff]  ;;  %s2744_s17 = smov (!%p380_p3, %s1763_s17), 7  ;;  %vm813_vm0 = vcmask 1040384  }
   0xf   : > { %431 = vperm.xlu0 %1825, %v398_v1   ;;  %421 = vperm.xlu1 %1827, %v396_v2   ;;  %v394_v9 = vld [vmem:[%s2732_s1 + $0x10] sm:$0xff]  ;;  %v392_v10 = vld [vmem:[%s2732_s1] sm:$0xff]  ;;  %v624_v13 = vld [vmem:[%s2733_s2 + $0x28] sm:$0xff]  ;;  %s1764_s18 = sshll.u32 %s2744_s17, 1  ;;  %v2272_v40 = vshrl.u32 %v435_v39, 7  ;;  %vm800_vm1 = vcmask 408576   ;;  %s388_s13 = scalar_lea.vmem %s2742_s11, %s2744_s17 }
  0x10   : > { %858 = vmatprep.mubr.bf16.mxu0 %v2079_v3  ;;  %929 = vmatprep.mubr.bf16.mxu1 %v2079_v3  ;;  %v623_v11 = vld [vmem:[%s2733_s2 + $0x20] sm:$0xff]  ;;  %v742_v15 = vld [vmem:[%s2735_s4 + $0x10] sm:$0xff]  ;;  %v1024_v19 = vld [vmem:[%s2737_s6 + $0x28] sm:$0xff]  ;;  %s383_s10 = scalar_lea.vmem %s2731_s0, %s1764_s18  ;;  %vm1705_vm2 = vcmp.lt.s32.totalorder %v435_v39, 512 }
  0x11   : > { %v619_v12 = vld [vmem:[%s2733_s2] sm:$0xff]  ;;  %v1025_v17 = vld [vmem:[%s2737_s6 + $0x30] sm:$0x3]  ;;  %v622_v20 = vld [vmem:[%s2733_s2 + $0x18] sm:$0xff]  ;;  %v533_v41 = vsub.s32 3, %v2272_v40  ;;  %v541_v42 = vsub.s32 7, %v2272_v40 }
  0x12   : > { %v744_v14 = vld [vmem:[%s2735_s4 + $0x20] sm:$0xff]  ;;  %v621_v18 = vld [vmem:[%s2733_s2 + $0x10] sm:$0xff]  ;;  %v1022_v21 = vld [vmem:[%s2737_s6 + $0x18] sm:$0xff]  ;;  %v441_v43 = vsub.s32 2, %v2272_v40  ;;  %v529_v44 = vsub.s32 1, %v2272_v40  ;;  %v449_v45 = vsub.s32 6, %v2272_v40 }
  0x13   : > { %1826 = vset.pattern.permute.xlu0 %v2080_v5  ;;  %426 = vperm.xlu1 %1827, %v397_v4   ;;  %v740_v16 = vld [vmem:[%s2735_s4] sm:$0xff]  ;;  %v620_v22 = vld [vmem:[%s2733_s2 + $0x8] sm:$0xff]  ;;  %v746_v24 = vld [vmem:[%s2735_s4 + $0x30] sm:$0x3]  ;;  %v537_v47 = vsub.s32 5, %v2272_v40  ;;  %v2284_v48 = vsub.s32 0, %v2272_v40 }
  0x14   : > { %524 = vperm.xlu0 %1826, %v398_v1   ;;  %v1020_v23 = vld [vmem:[%s2737_s6 + $0x8] sm:$0xff]  ;;  %v1300_v25 = vld [vmem:[%s2739_s8 + $0x20] sm:$0xff]  ;;  %v1298_v27 = vld [vmem:[%s2739_s8 + $0x10] sm:$0xff]  ;;  %v445_v50 = vsub.s32 4, %v2272_v40 }
  0x15   : > { %v745_v26 = vld [vmem:[%s2735_s4 + $0x28] sm:$0xff]  ;;  %v743_v28 = vld [vmem:[%s2735_s4 + $0x18] sm:$0xff]  ;;  %v1296_v29 = vld [vmem:[%s2739_s8] sm:$0xff] }
  0x16   : > { %v741_v30 = vld [vmem:[%s2735_s4 + $0x8] sm:$0xff]  ;;  %v1567_v31 = vld [vmem:[#allocation2] sm:$0x1]  ;;  %v1021_v33 = vld [vmem:[%s2737_s6 + $0x10] sm:$0xff] }
  0x17   : > { %1828 = vset.pattern.permute.xlu1 %v2080_v5  ;;  %v1023_v32 = vld [vmem:[%s2737_s6 + $0x20] sm:$0xff]  ;;  %v1302_v35 = vld [vmem:[%s2739_s8 + $0x30] sm:$0x3]  ;;  %v1301_v36 = vld [vmem:[%s2739_s8 + $0x28] sm:$0xff] }
  0x18   : > { %520 = vperm.xlu0 %1826, %v397_v4   ;;  %516 = vperm.xlu1 %1828, %v396_v2   ;;  %v1019_v34 = vld [vmem:[%s2737_s6] sm:$0xff]  ;;  %v1299_v37 = vld [vmem:[%s2739_s8 + $0x18] sm:$0xff]  ;;  %v1297_v38 = vld [vmem:[%s2739_s8 + $0x8] sm:$0xff] }
  0x19   : > { %v391_v46 = vld [vmem:[%s383_s10] sm:$0xff] }
  0x1a   : > { %v534_v49 = vrot.slane %v391_v46, %v533_v41  ;;  %v542_v53 = vrot.slane %v391_v46, %v541_v42  ;;  %v442_v54 = vrot.slane %v391_v46, %v441_v43  ;;  %v530_v55 = vrot.slane %v391_v46, %v529_v44 }
  0x1b   : > { %v450_v56 = vrot.slane %v391_v46, %v449_v45  ;;  %v538_v57 = vrot.slane %v391_v46, %v537_v47  ;;  %v438_v58 = vrot.slane %v391_v46, %v2284_v48  ;;  %v446_v60 = vrot.slane %v391_v46, %v445_v50 }
  0x1c   : > { %1829 = vset.pattern.permute.xlu1 %v2079_v3  ;;  %512 = vperm.xlu0 %1826, %v395_v6   ;;  %v2288_v59 = vrot.slane %v534_v49, %v529_v44  ;;  %v2290_v62 = vrot.slane %v542_v53, %v529_v44  ;;  %v2293_v63 = vrot.slane %v442_v54, %v2284_v48 }
  0x1d   : > { %658 = vperm.xlu1 %1829, %v625_v7   ;;  %v2295_v0 = vrot.slane %v530_v55, %v529_v44  ;;  %v2298_v1 = vrot.slane %v450_v56, %v2284_v48  ;;  %v2300_v4 = vrot.slane %v538_v57, %v529_v44 }
  0x20   : > { %504 = vperm.xlu0 %1826, %v393_v8  }
  0x21   : > { %416 = vperm.xlu1 %1829, %v395_v6  }
  0x24   : > { %1833 = vset.pattern.permute.xlu0 %v2079_v3 }
  0x25   : > { %1830 = vset.pattern.permute.xlu1 %v2080_v5  ;;  %411 = vperm.xlu0 %1833, %v394_v9  }
  0x26   : > { %508 = vperm.xlu1 %1830, %v394_v9  }
  0x29   : > { %401 = vperm.xlu0 %1833, %v392_v10  }
  0x2a   : > { %1831 = vset.pattern.permute.xlu1 %v2079_v3 }
  0x2b   : > { %648 = vperm.xlu1 %1831, %v623_v11  }
  0x2d   : > { %628 = vperm.xlu0 %1833, %v619_v12  }
  0x2f   : > { %653 = vperm.xlu1 %1831, %v624_v13  }
  0x31   : > { %769 = vperm.xlu0 %1833, %v744_v14  }
  0x33   : > { %406 = vperm.xlu1 %1831, %v393_v8   ;;  %v2308_v8 = vrot.slane %v446_v60, %v2284_v48 }
  0x35   : > { %759 = vperm.xlu0 %1833, %v742_v15  }
  0x37   : > { %1832 = vset.pattern.permute.xlu1 %v2080_v5  ;;  %v2303_v5 = vrot.slane %v438_v58, %v2284_v48 }
  0x38   : > { %500 = vperm.xlu1 %1832, %v392_v10  }
  0x39   : > { %749 = vperm.xlu0 %1833, %v740_v16  }
  0x3c   : > { %1834 = vset.pattern.permute.xlu1 %v2079_v3 }
  0x3d   : > { %1058 = vperm.xlu0 %1833, %v1025_v17   ;;  %638 = vperm.xlu1 %1834, %v621_v18  }
  0x41   : > { %1053 = vperm.xlu0 %1833, %v1024_v19   ;;  %643 = vperm.xlu1 %1834, %v622_v20  }
  0x45   : > { %1043 = vperm.xlu0 %1833, %v1022_v21   ;;  %633 = vperm.xlu1 %1834, %v620_v22  }
  0x49   : > { %1033 = vperm.xlu0 %1833, %v1020_v23   ;;  %779 = vperm.xlu1 %1834, %v746_v24  }
  0x4d   : > { %1325 = vperm.xlu0 %1833, %v1300_v25   ;;  %774 = vperm.xlu1 %1834, %v745_v26  }
  0x51   : > { %1315 = vperm.xlu0 %1833, %v1298_v27   ;;  %764 = vperm.xlu1 %1834, %v743_v28  }
  0x55   : > { %1305 = vperm.xlu0 %1833, %v1296_v29   ;;  %754 = vperm.xlu1 %1834, %v741_v30  }
  0x59   : > { %1570 = vperm.xlu0 %1833, %v1567_v31   ;;  %1048 = vperm.xlu1 %1834, %v1023_v32  }
  0x5d   : > { %1038 = vperm.xlu1 %1834, %v1021_v33  }
  0x61   : > { %1028 = vperm.xlu1 %1834, %v1019_v34  }
  0x65   : > { %1335 = vperm.xlu1 %1834, %v1302_v35  }
  0x69   : > { %1330 = vperm.xlu1 %1834, %v1301_v36  }
  0x6d   : > { %1320 = vperm.xlu1 %1834, %v1299_v37  }
  0x71   : > { %1310 = vperm.xlu1 %1834, %v1297_v38  }
  0x8a   : > { %v422_v51 = vpop.permute.xlu1 %421  ;;  %v432_v52 = vpop.permute.xlu0 %431 }
  0x8b   : > { %v496_v6 = vmul.f32 %v2293_v63, %v432_v52  ;;  %v498_v9 = vmul.f32 %v2298_v1, %v432_v52  ;;  %v495_v11 = vmul.f32 %v2303_v5, %v432_v52  ;;  %v497_v14 = vmul.f32 %v2308_v8, %v432_v52 }
  0x8c   : > { %v487_v33 = vmul.f32 %v2303_v5, %v422_v51  ;;  %v488_v34 = vmul.f32 %v2293_v63, %v422_v51  ;;  %v489_v35 = vmul.f32 %v2308_v8, %v422_v51  ;;  %v490_v36 = vmul.f32 %v2298_v1, %v422_v51 }
  0x8e   : > { %v427_v61 = vpop.permute.xlu1 %426 }
  0x8f   : > { %v525_v2 = vpop.permute.xlu0 %524  ;;  %v491_v46 = vmul.f32 %v2303_v5, %v427_v61  ;;  %v492_v47 = vmul.f32 %v2293_v63, %v427_v61  ;;  %v493_v51 = vmul.f32 %v2308_v8, %v427_v61  ;;  %v494_v57 = vmul.f32 %v2298_v1, %v427_v61 }
  0x90   : > { %v588_v7 = vmul.f32 %v2288_v59, %v525_v2  ;;  %v590_v10 = vmul.f32 %v2290_v62, %v525_v2  ;;  %v587_v12 = vmul.f32 %v2295_v0, %v525_v2  ;;  %v589_v15 = vmul.f32 %v2300_v4, %v525_v2 }
  0x92   : > { %v616_v16 = vadd.f32 %v588_v7, %v496_v6  ;;  %v618_v17 = vadd.f32 %v590_v10, %v498_v9  ;;  %v615_v18 = vadd.f32 %v587_v12, %v495_v11  ;;  %v617_v20 = vadd.f32 %v589_v15, %v497_v14 }
  0x93   : > { %v517_v13 = vpop.permute.xlu1 %516  ;;  %v521_v21 = vpop.permute.xlu0 %520 }
  0x94   : > { %v579_v28 = vmul.f32 %v2295_v0, %v517_v13  ;;  %v580_v29 = vmul.f32 %v2288_v59, %v517_v13  ;;  %v581_v30 = vmul.f32 %v2300_v4, %v517_v13  ;;  %v582_v32 = vmul.f32 %v2290_v62, %v517_v13 }
  0x95   : > { %v583_v37 = vmul.f32 %v2295_v0, %v521_v21  ;;  %v584_v38 = vmul.f32 %v2288_v59, %v521_v21  ;;  %v585_v41 = vmul.f32 %v2300_v4, %v521_v21  ;;  %v586_v49 = vmul.f32 %v2290_v62, %v521_v21 }
  0x96   : > { %v607_v43 = vadd.f32 %v579_v28, %v487_v33  ;;  %v608_v44 = vadd.f32 %v580_v29, %v488_v34  ;;  %v609_v45 = vadd.f32 %v581_v30, %v489_v35  ;;  %v610_v52 = vadd.f32 %v582_v32, %v490_v36 }
  0x97   : > { %v2318_v27 = vpop.permute.xlu0 %512  ;;  %v611_v60 = vadd.f32 %v583_v37, %v491_v46  ;;  %v612_v2 = vadd.f32 %v584_v38, %v492_v47  ;;  %v613_v6 = vadd.f32 %v585_v41, %v493_v51  ;;  %v614_v10 = vadd.f32 %v586_v49, %v494_v57 }
  0x98   : > { %v659_v19 = vpop.permute.xlu1 %658  ;;  %v577_v28 = vmul.f32 %v2300_v4, %v2318_v27  ;;  %v2354_v29 = vmul.f32 %v2290_v62, %v2318_v27 }
  0x99   : > { %v686_v22 = vadd.f32 %v659_v19, %v616_v16  ;;  %v688_v23 = vadd.f32 %v659_v19, %v618_v17  ;;  %v685_v24 = vadd.f32 %v659_v19, %v615_v18  ;;  %v687_v25 = vadd.f32 %v659_v19, %v617_v20 }
  0x9b   : > { %1847 = vtanh.f32 %v686_v22  ;;  %v2333_v42 = vpop.permute.xlu0 %504 }
  0x9c   : > { %v2316_v26 = vpop.permute.xlu1 %416  ;;  %1849 = vtanh.f32 %v688_v23  ;;  %v575_v23 = vmul.f32 %v2295_v0, %v2318_v27  ;;  %v2360_v32 = vmul.f32 %v2295_v0, %v2333_v42 }
  0x9d   : > { %1851 = vtanh.f32 %v685_v24  ;;  %v576_v24 = vmul.f32 %v2288_v59, %v2318_v27  ;;  %v483_v30 = vmul.f32 %v2303_v5, %v2316_v26  ;;  %v484_v27 = vmul.f32 %v2293_v63, %v2316_v26 }
  0x9e   : > { %1853 = vtanh.f32 %v687_v25  ;;  %v485_v38 = vmul.f32 %v2308_v8, %v2316_v26 }
  0xa0   : > { %v412_v12 = vpop.permute.xlu0 %411 }
  0xa1   : > { %v2323_v31 = vpop.permute.xlu1 %508  ;;  %v479_v41 = vmul.f32 %v2303_v5, %v412_v12 }
  0xa2   : > { %v572_v51 = vmul.f32 %v2288_v59, %v2323_v31 }
  0xa4   : > { %v402_v33 = vpop.permute.xlu0 %401 }
  0xa5   : > { %v471_v34 = vmul.f32 %v2303_v5, %v402_v33  ;;  %v472_v35 = vmul.f32 %v2293_v63, %v402_v33  ;;  %v473_v36 = vmul.f32 %v2308_v8, %v402_v33  ;;  %v474_v37 = vmul.f32 %v2298_v1, %v402_v33 }
  0xa6   : > { %v649_v50 = vpop.permute.xlu1 %648 }
  0xa7   : > { %v677_v53 = vadd.f32 %v649_v50, %v607_v43  ;;  %v678_v54 = vadd.f32 %v649_v50, %v608_v44  ;;  %v679_v55 = vadd.f32 %v649_v50, %v609_v45  ;;  %v680_v58 = vadd.f32 %v649_v50, %v610_v52 }
  0xa8   : > { %v1848_v56 = vpop.eup %1847  ;;  %v571_v43 = vmul.f32 %v2295_v0, %v2323_v31  ;;  %v480_v50 = vmul.f32 %v2293_v63, %v412_v12  ;;  %v481_v52 = vmul.f32 %v2308_v8, %v412_v12 }
  0xa9   : > { %1855 = vtanh.f32 %v677_v53  ;;  %v737_v7 = vpack.c.bf16 %v1848_v56, %v1848_v56  ;;  %v1850_v11 = vpop.eup %1849  ;;  %v573_v53 = vmul.f32 %v2300_v4, %v2323_v31 }
  0xaa   : > { %1857 = vtanh.f32 %v678_v54  ;;  %v654_v9 = vpop.permute.xlu1 %653  ;;  %v1852_v16 = vpop.eup %1851  ;;  %v739_v17 = vpack.c.bf16 %v1850_v11, %v1850_v11 }
  0xab   : > { %1859 = vtanh.f32 %v679_v55  ;;  %v681_v13 = vadd.f32 %v654_v9, %v611_v60  ;;  %v682_v14 = vadd.f32 %v654_v9, %v612_v2  ;;  %v683_v15 = vadd.f32 %v654_v9, %v613_v6  ;;  %1770 = vmatprep.subr.msk.bf16.mxu0 %vm813_vm0, %v737_v7  ;;  %v1854_v18 = vpop.eup %1853 }
  0xac   : > { %1861 = vtanh.f32 %v680_v58  ;;  %v684_v61 = vadd.f32 %v654_v9, %v614_v10  ;;  %v736_v19 = vpack.c.bf16 %v1852_v16, %v1852_v16  ;;  %1775 = vmatprep.subr.msk.bf16.mxu1 %vm813_vm0, %v739_v17  ;;  %v738_v20 = vpack.c.bf16 %v1854_v18, %v1854_v18  ;;  %v629_v9 = vpop.permute.xlu0 %628 }
  0xad   : > { %1863 = vtanh.f32 %v681_v13  ;;  %v486_v60 = vmul.f32 %v2298_v1, %v2316_v26  ;;  %v568_v2 = vmul.f32 %v2288_v59, %v2333_v42  ;;  %v482_v6 = vmul.f32 %v2298_v1, %v412_v12 }
  0xae   : > { %1865 = vtanh.f32 %v682_v14  ;;  %v2342_v21 = vpop.permute.xlu1 %406  ;;  %v815_v22 = vsel %vm813_vm0, %v736_v19, 0  ;;  %v821_v25 = vsel %vm813_vm0, %v738_v20, 0  ;;  %v574_v7 = vmul.f32 %v2290_v62, %v2323_v31 }
  0xaf   : > { %1867 = vtanh.f32 %v683_v15  ;;  %835 = vmatpush1.bf16.msra.mxu0 %v815_v22  ;;  %906 = vmatpush1.bf16.msra.mxu1 %v821_v25  ;;  %v599_v16 = vadd.f32 %v571_v43, %v479_v41  ;;  %v600_v18 = vadd.f32 %v572_v51, %v480_v50  ;;  %v603_v19 = vadd.f32 %v575_v23, %v483_v30 }
  0xb0   : > { %1869 = vtanh.f32 %v684_v61  ;;  %v604_v26 = vadd.f32 %v576_v24, %v484_v27  ;;  %v605_v12 = vadd.f32 %v577_v28, %v485_v38  ;;  %v602_v31 = vadd.f32 %v574_v7, %v482_v6 }
  0xb1   : > { %v476_v24 = vmul.f32 %v2293_v63, %v2342_v21  ;;  %v477_v28 = vmul.f32 %v2308_v8, %v2342_v21  ;;  %v569_v63 = vmul.f32 %v2300_v4, %v2333_v42  ;;  %v570_v50 = vmul.f32 %v2290_v62, %v2333_v42 }
  0xb3   : > { %v501_v44 = vpop.permute.xlu1 %500 }
  0xb4   : > { %v563_v45 = vmul.f32 %v2295_v0, %v501_v44  ;;  %v564_v46 = vmul.f32 %v2288_v59, %v501_v44  ;;  %v565_v47 = vmul.f32 %v2300_v4, %v501_v44  ;;  %v566_v49 = vmul.f32 %v2290_v62, %v501_v44 }
  0xb5   : > { %v601_v59 = vadd.f32 %v573_v53, %v481_v52 }
  0xb6   : > { %v1856_v54 = vpop.eup %1855  ;;  %v591_v55 = vadd.f32 %v563_v45, %v471_v34  ;;  %v592_v56 = vadd.f32 %v564_v46, %v472_v35  ;;  %v593_v0 = vadd.f32 %v565_v47, %v473_v36  ;;  %v594_v57 = vadd.f32 %v566_v49, %v474_v37 }
  0xb7   : > { %v1858_v58 = vpop.eup %1857  ;;  %v475_v36 = vmul.f32 %v2303_v5, %v2342_v21  ;;  %v478_v5 = vmul.f32 %v2298_v1, %v2342_v21  ;;  %v606_v45 = vadd.f32 %v2354_v29, %v486_v60  ;;  %v596_v1 = vadd.f32 %v568_v2, %v476_v24 }
  0xb8   : > { %v1860_v10 = vpop.eup %1859  ;;  %v661_v11 = vadd.f32 %v629_v9, %v591_v55  ;;  %v662_v13 = vadd.f32 %v629_v9, %v592_v56  ;;  %v663_v14 = vadd.f32 %v629_v9, %v593_v0  ;;  %v639_v15 = vpop.permute.xlu1 %638  ;;  %v664_v17 = vadd.f32 %v629_v9, %v594_v57 }
  0xb9   : > { %v1862_v61 = vpop.eup %1861  ;;  %v669_v22 = vadd.f32 %v639_v15, %v599_v16  ;;  %v670_v33 = vadd.f32 %v639_v15, %v600_v18  ;;  %v671_v37 = vadd.f32 %v639_v15, %v601_v59  ;;  %v672_v30 = vadd.f32 %v639_v15, %v602_v31  ;;  %v1836_v59 = vld [vmem:[%s2734_s3 + $0x8] sm:$0xff]   ;;  %v2434_v31 = vpop.permute.xlu0 %769 }
  0xba   : > { %v1864_v20 = vpop.eup %1863  ;;  %1871 = vtanh.f32 %v661_v11  ;;  %v595_v49 = vadd.f32 %v2360_v32, %v475_v36  ;;  %v597_v21 = vadd.f32 %v569_v63, %v477_v28  ;;  %v598_v51 = vadd.f32 %v570_v50, %v478_v5 }
  0xbb   : > { %v1866_v25 = vpop.eup %1865  ;;  %1873 = vtanh.f32 %v662_v13  ;;  %v732_v34 = vpack.c.bf16 %v1864_v20, %v1856_v54  ;;  %v1835_v20 = vld [vmem:[%s2734_s3] sm:$0xff]  }
  0xbc   : > { %v1868_v35 = vpop.eup %1867  ;;  %1875 = vtanh.f32 %v663_v14  ;;  %v644_v41 = vpop.permute.xlu1 %643  ;;  %v733_v43 = vpack.c.bf16 %v1866_v25, %v1858_v58 }
  0xbd   : > { %v1870_v23 = vpop.eup %1869  ;;  %1877 = vtanh.f32 %v664_v17  ;;  %v673_v27 = vadd.f32 %v644_v41, %v603_v19  ;;  %v734_v44 = vpack.c.bf16 %v1868_v35, %v1860_v10  ;;  %v674_v46 = vadd.f32 %v644_v41, %v604_v26 }
  0xbe   : > { %1879 = vtanh.f32 %v669_v22  ;;  %836 = vmatprep.subr.bf16.mxu0 %v733_v43  ;;  %v735_v38 = vpack.c.bf16 %v1870_v23, %v1862_v61  ;;  %v675_v8 = vadd.f32 %v644_v41, %v605_v12  ;;  %v676_v52 = vadd.f32 %v644_v41, %v606_v45  ;;  %v1837_v22 = vld [vmem:[%s2734_s3 + $0x10] sm:$0xff]   ;;  %v1838_v12 = vld [vmem:[%s2734_s3 + $0x18] ss:$0 sps:$4 sm:$0x11]   ;;  %v2444_v43 = vpop.permute.xlu0 %759 }
  0xbf   : > { %1881 = vtanh.f32 %v670_v33  ;;  %837 = vmatpush1.bf16.msra.mxu0 %v732_v34 }
  0xc0   : > { %1883 = vtanh.f32 %v671_v37  ;;  %907 = vmatprep.subr.bf16.mxu1 %v735_v38  ;;  %v634_v47 = vpop.permute.xlu1 %633 }
  0xc1   : > { %1885 = vtanh.f32 %v672_v30  ;;  %908 = vmatpush1.bf16.msra.mxu1 %v734_v44  ;;  %v665_v29 = vadd.f32 %v634_v47, %v595_v49  ;;  %v666_v53 = vadd.f32 %v634_v47, %v596_v1  ;;  %v667_v4 = vadd.f32 %v634_v47, %v597_v21 }
  0xc2   : > { %1887 = vtanh.f32 %v673_v27  ;;  %v668_v54 = vadd.f32 %v634_v47, %v598_v51  ;;  %v2454_v5 = vpop.permute.xlu0 %749 }
  0xc3   : > { %1889 = vtanh.f32 %v674_v46 }
  0xc4   : > { %1891 = vtanh.f32 %v675_v8  ;;  %v2432_v25 = vpop.permute.xlu1 %779 }
  0xc5   : > { %1893 = vtanh.f32 %v676_v52 }
  0xc6   : > { %1895 = vtanh.f32 %v665_v29 }
  0xc7   : > { %v1872_v55 = vpop.eup %1871  ;;  %1897 = vtanh.f32 %v666_v53 }
  0xc8   : > { %v1874_v32 = vpop.eup %1873  ;;  %1899 = vtanh.f32 %v667_v4  ;;  %v2438_v34 = vpop.permute.xlu1 %774 }
  0xc9   : > { %v1876_v62 = vpop.eup %1875  ;;  %1901 = vtanh.f32 %v668_v54 }
  0xca   : > { %v1878_v42 = vpop.eup %1877 }
  0xcb   : > { %v1880_v56 = vpop.eup %1879 }
  0xcc   : > { %v1882_v0 = vpop.eup %1881  ;;  %v2448_v28 = vpop.permute.xlu1 %764 }
  0xcd   : > { %v1884_v57 = vpop.eup %1883 }
  0xce   : > { %v1886_v58 = vpop.eup %1885 }
  0xcf   : > { %v1888_v60 = vpop.eup %1887 }
  0xd0   : > { %v1890_v2 = vpop.eup %1889  ;;  %v728_v6 = vpack.c.bf16 %v1888_v60, %v1880_v56  ;;  %v2456_v63 = vpop.permute.xlu1 %754 }
  0xd1   : > { %v1892_v7 = vpop.eup %1891  ;;  %v729_v9 = vpack.c.bf16 %v1890_v2, %v1882_v0 }
  0xd2   : > { %v1894_v10 = vpop.eup %1893  ;;  %v730_v11 = vpack.c.bf16 %v1892_v7, %v1884_v57 }
  0xd3   : > { %v1896_v13 = vpop.eup %1895  ;;  %838 = vmatprep.subr.bf16.mxu0 %v729_v9  ;;  %v731_v14 = vpack.c.bf16 %v1894_v10, %v1886_v58 }
  0xd4   : > { %v1898_v15 = vpop.eup %1897  ;;  %839 = vmatpush1.bf16.msra.mxu0 %v728_v6  ;;  %v724_v16 = vpack.c.bf16 %v1896_v13, %v1872_v55 }
  0xd5   : > { %v1900_v61 = vpop.eup %1899  ;;  %909 = vmatprep.subr.bf16.mxu1 %v731_v14  ;;  %v725_v17 = vpack.c.bf16 %v1898_v15, %v1874_v32 }
  0xd6   : > { %v1902_v18 = vpop.eup %1901  ;;  %910 = vmatpush1.bf16.msra.mxu1 %v730_v11  ;;  %v726_v19 = vpack.c.bf16 %v1900_v61, %v1876_v62 }
  0xd7   : > { %840 = vmatprep.subr.bf16.mxu0 %v725_v17  ;;  %v727_v26 = vpack.c.bf16 %v1902_v18, %v1878_v42 }
  0xd8   : > { %841 = vmatpush1.bf16.msra.mxu0 %v724_v16 }
  0xd9   : > { %911 = vmatprep.subr.bf16.mxu1 %v727_v26 }
  0xda   : > { %912 = vmatpush1.bf16.msra.mxu1 %v726_v19 }
  0xdb   : > { %1771 = vmatmul.mubr.msk.bf16.vlgmr.msra.gmra.mxu0 %vm800_vm1, %v1835_v20 }
  0xdc   : > { %868 = vmatprep.mubr.bf16.mxu0 %v2079_v3 }
  0xdd   : > { %1776 = vmatmul.mubr.msk.bf16.vlgmr.msra.gmra.mxu1 %vm800_vm1, %v1835_v20 }
  0xde   : > { %939 = vmatprep.mubr.bf16.mxu1 %v2079_v3 }
  0xe3   : > { %1772 = vmatmul.mubr.msk.bf16.gmra.mxu0 %vm800_vm1, %v1836_v59 }
  0xe4   : > { %878 = vmatprep.mubr.bf16.mxu0 %v2079_v3 }
  0xe5   : > { %1777 = vmatmul.mubr.msk.bf16.gmra.mxu1 %vm800_vm1, %v1836_v59 }
  0xe6   : > { %949 = vmatprep.mubr.bf16.mxu1 %v2079_v3 }
  0xeb   : > { %1773 = vmatmul.mubr.msk.bf16.gmra.mxu0 %vm800_vm1, %v1837_v22 }
  0xec   : > { %888 = vmatprep.mubr.bf16.mxu0 %v2079_v3 }
  0xed   : > { %1778 = vmatmul.mubr.msk.bf16.gmra.mxu1 %vm800_vm1, %v1837_v22 }
  0xee   : > { %959 = vmatprep.mubr.bf16.mxu1 %v2079_v3 }
  0xf3   : > { %1774 = vmatmul.mubr.msk.bf16.gmra.mxu0 %vm800_vm1, %v1838_v12 }
  0xf4   : > { %1135 = vmatprep.mubr.bf16.mxu0 %v2079_v3 }
  0xf5   : > { %1779 = vmatmul.mubr.msk.bf16.gmra.mxu1 %vm800_vm1, %v1838_v12 }
  0xf6   : > { %1206 = vmatprep.mubr.bf16.mxu1 %v2079_v3 }
 0x19b   : > { %v2436_v33 = vpop.f32.mrf.mxu0 }
 0x19d   : > { %v2440_v35 = vpop.f32.mrf.mxu1  ;;  %v862_v36 = vpop.f32.mrf.mxu0 }
 0x19e   : > { %v863_v8 = vadd.f32 %v862_v36, %v2454_v5 }
 0x19f   : > { %v933_v37 = vpop.f32.mrf.mxu1  ;;  %v2442_v41 = vpop.f32.mrf.mxu0 }
 0x1a0   : > { %v934_v47 = vadd.f32 %v933_v37, %v2454_v5  ;;  %1903 = vtanh.f32 %v863_v8 }
 0x1a1   : > { %v2446_v23 = vpop.f32.mrf.mxu1  ;;  %v866_v24 = vpop.f32.mrf.mxu0 }
 0x1a2   : > { %v867_v52 = vadd.f32 %v866_v24, %v2456_v63  ;;  %1905 = vtanh.f32 %v934_v47 }
 0x1a3   : > { %v937_v30 = vpop.f32.mrf.mxu1  ;;  %v2450_v27 = vpop.f32.mrf.mxu0 }
 0x1a4   : > { %v938_v1 = vadd.f32 %v937_v30, %v2456_v63  ;;  %1907 = vtanh.f32 %v867_v52 }
 0x1a5   : > { %v2452_v38 = vpop.f32.mrf.mxu1  ;;  %v872_v44 = vpop.f32.mrf.mxu0 }
 0x1a6   : > { %v873_v51 = vadd.f32 %v872_v44, %v2444_v43  ;;  %1909 = vtanh.f32 %v938_v1 }
 0x1a7   : > { %v943_v45 = vpop.f32.mrf.mxu1  ;;  %v874_v46 = vpop.f32.mrf.mxu0 }
 0x1a8   : > { %v944_v53 = vadd.f32 %v943_v45, %v2444_v43  ;;  %1911 = vtanh.f32 %v873_v51  ;;  %v871_v45 = vadd.f32 %v2450_v27, %v2444_v43  ;;  %v861_v27 = vadd.f32 %v2436_v33, %v2454_v5 }
 0x1a9   : > { %v945_v49 = vpop.f32.mrf.mxu1  ;;  %v876_v50 = vpop.f32.mrf.mxu0 }
 0x1aa   : > { %v877_v55 = vadd.f32 %v876_v50, %v2448_v28  ;;  %1913 = vtanh.f32 %v944_v53  ;;  %v946_v30 = vadd.f32 %v945_v49, %v2448_v28  ;;  %v865_v50 = vadd.f32 %v2442_v41, %v2456_v63 }
 0x1ab   : > { %v947_v21 = vpop.f32.mrf.mxu1  ;;  %v880_v29 = vpop.f32.mrf.mxu0 }
 0x1ac   : > { %v948_v32 = vadd.f32 %v947_v21, %v2448_v28  ;;  %1915 = vtanh.f32 %v877_v55  ;;  %v881_v22 = vadd.f32 %v880_v29, %v2434_v31 }
 0x1ad   : > { %v951_v4 = vpop.f32.mrf.mxu1  ;;  %v882_v54 = vpop.f32.mrf.mxu0 }
 0x1ae   : > { %v883_v56 = vadd.f32 %v882_v54, %v2434_v31  ;;  %1917 = vtanh.f32 %v948_v32  ;;  %v2475_v18 = vpop.eup %1903  ;;  %v952_v36 = vadd.f32 %v951_v4, %v2434_v31 }
 0x1af   : > { %v953_v62 = vpop.f32.mrf.mxu1  ;;  %v884_v42 = vpop.f32.mrf.mxu0 }
 0x1b0   : > { %1919 = vtanh.f32 %v883_v56  ;;  %v954_v14 = vadd.f32 %v953_v62, %v2434_v31  ;;  %v885_v61 = vadd.f32 %v884_v42, %v2438_v34  ;;  %v2478_v59 = vpop.eup %1905  ;;  %v942_v31 = vadd.f32 %v2452_v38, %v2444_v43 }
 0x1b1   : > { %v955_v0 = vpop.f32.mrf.mxu1  ;;  %v886_v57 = vpop.f32.mrf.mxu0  ;;  %v932_v43 = vadd.f32 %v2440_v35, %v2454_v5 }
 0x1b2   : > { %v887_v58 = vadd.f32 %v886_v57, %v2438_v34  ;;  %v956_v19 = vadd.f32 %v955_v0, %v2438_v34  ;;  %v2481_v12 = vpop.eup %1907 }
 0x1b3   : > { %v957_v60 = vpop.f32.mrf.mxu1  ;;  %v890_v2 = vpop.f32.mrf.mxu0 }
 0x1b4   : > { %v958_v6 = vadd.f32 %v957_v60, %v2438_v34  ;;  %v891_v7 = vadd.f32 %v890_v2, %v2432_v25  ;;  %1921 = vtanh.f32 %v887_v58  ;;  %v2484_v24 = vpop.eup %1909 }
 0x1b5   : > { %v961_v9 = vpop.f32.mrf.mxu1  ;;  %v892_v10 = vpop.f32.mrf.mxu0 }
 0x1b6   : > { %1923 = vtanh.f32 %v958_v6  ;;  %v962_v11 = vadd.f32 %v961_v9, %v2432_v25  ;;  %v893_v13 = vadd.f32 %v892_v10, %v2432_v25  ;;  %v1912_v34 = vpop.eup %1911 }
 0x1b7   : > { %1925 = vtanh.f32 %v891_v7  ;;  %v963_v15 = vpop.f32.mrf.mxu1  ;;  %v894_v16 = vpop.f32.mrf.mxu0 }
 0x1b8   : > { %1927 = vtanh.f32 %v962_v11  ;;  %v964_v17 = vadd.f32 %v963_v15, %v2432_v25  ;;  %v875_v25 = vadd.f32 %v874_v46, %v2448_v28  ;;  %v1914_v44 = vpop.eup %1913  ;;  %v936_v28 = vadd.f32 %v2446_v23, %v2456_v63 }
 0x1b9   : > { %1929 = vtanh.f32 %v893_v13  ;;  %v965_v26 = vpop.f32.mrf.mxu1  ;;  %v895_v20 = vpop.f32.mrf.mxu0  ;;  %v1004_v11 = vpack.c.bf16 %v2481_v12, %v2475_v18  ;;  %v1840_v18 = vld [vmem:[%s2736_s5 + $0x8] sm:$0xff]  }
 0x1ba   : > { %1931 = vtanh.f32 %v964_v17  ;;  %v1916_v8 = vpop.eup %1915  ;;  %v1841_v26 = vld [vmem:[%s2736_s5 + $0x10] sm:$0xff]   ;;  %v1842_v20 = vld [vmem:[%s2736_s5 + $0x18] ss:$0 sps:$4 sm:$0x11]  }
 0x1bb   : > { %1933 = vtanh.f32 %v954_v14  ;;  %v966_v37 = vpop.f32.mrf.mxu1  ;;  %v1918_v47 = vpop.eup %1917  ;;  %v1008_v57 = vpack.c.bf16 %v1916_v8, %v1912_v34  ;;  %v1006_v14 = vpack.c.bf16 %v2484_v24, %v2478_v59 }
 0x1bc   : > { %1935 = vtanh.f32 %v885_v61  ;;  %v1010_v60 = vpack.c.bf16 %v1918_v47, %v1914_v44  ;;  %v2536_v59 = vpop.permute.xlu0 %1058 }
 0x1bd   : > { %1937 = vtanh.f32 %v956_v19  ;;  %v1920_v46 = vpop.eup %1919  ;;  %v1839_v19 = vld [vmem:[%s2736_s5] sm:$0xff]  }
 0x1be   : > { %1939 = vtanh.f32 %v881_v22  ;;  %v2538_v22 = vpop.permute.xlu1 %1048 }
 0x1bf   : > { %1941 = vtanh.f32 %v952_v36 }
 0x1c0   : > { %1943 = vtanh.f32 %v875_v25  ;;  %v2542_v36 = vpop.permute.xlu0 %1053 }
 0x1c1   : > { %1945 = vtanh.f32 %v946_v30  ;;  %v1922_v49 = vpop.eup %1921 }
 0x1c2   : > { %1947 = vtanh.f32 %v871_v45  ;;  %v1012_v35 = vpack.c.bf16 %v1922_v49, %v1920_v46  ;;  %v2548_v30 = vpop.permute.xlu1 %1038 }
 0x1c3   : > { %v1924_v52 = vpop.eup %1923  ;;  %1949 = vtanh.f32 %v942_v31 }
 0x1c4   : > { %v1926_v38 = vpop.eup %1925  ;;  %1951 = vtanh.f32 %v865_v50  ;;  %v2552_v8 = vpop.permute.xlu0 %1043 }
 0x1c5   : > { %v1928_v1 = vpop.eup %1927  ;;  %1953 = vtanh.f32 %v936_v28  ;;  %v1015_v41 = vpack.c.bf16 %v1926_v38, %v1926_v38 }
 0x1c6   : > { %v1930_v21 = vpop.eup %1929  ;;  %1955 = vtanh.f32 %v861_v27  ;;  %v1017_v29 = vpack.c.bf16 %v1928_v1, %v1928_v1  ;;  %v2558_v28 = vpop.permute.xlu1 %1028 }
 0x1c7   : > { %v1932_v23 = vpop.eup %1931  ;;  %1957 = vtanh.f32 %v932_v43  ;;  %v1016_v63 = vpack.c.bf16 %v1930_v21, %v1930_v21  ;;  %v1092_v4 = vsel %vm813_vm0, %v1015_v41, 0 }
 0x1c8   : > { %v1934_v51 = vpop.eup %1933  ;;  %v1018_v53 = vpack.c.bf16 %v1932_v23, %v1932_v23  ;;  %v1098_v54 = vsel %vm813_vm0, %v1017_v29, 0  ;;  %v2561_v43 = vpop.permute.xlu0 %1033 }
 0x1c9   : > { %v1936_v33 = vpop.eup %1935  ;;  %1784 = vmatprep.subr.msk.bf16.mxu0 %vm813_vm0, %v1016_v63  ;;  %v1014_v55 = vpack.c.bf16 %v1924_v52, %v1934_v51 }
 0x1ca   : > { %v1938_v5 = vpop.eup %1937  ;;  %1789 = vmatprep.subr.msk.bf16.mxu1 %vm813_vm0, %v1018_v53  ;;  %1112 = vmatpush1.bf16.msra.mxu0 %v1092_v4 }
 0x1cb   : > { %v1940_v32 = vpop.eup %1939  ;;  %1183 = vmatpush1.bf16.msra.mxu1 %v1098_v54  ;;  %1113 = vmatprep.subr.bf16.mxu0 %v1012_v35 }
 0x1cc   : > { %v1942_v62 = vpop.eup %1941  ;;  %1184 = vmatprep.subr.bf16.mxu1 %v1014_v55  ;;  %v1011_v42 = vpack.c.bf16 %v1936_v33, %v1940_v32 }
 0x1cd   : > { %v1944_v56 = vpop.eup %1943  ;;  %v1013_v0 = vpack.c.bf16 %v1938_v5, %v1942_v62 }
 0x1ce   : > { %v1946_v58 = vpop.eup %1945  ;;  %1114 = vmatpush1.bf16.msra.mxu0 %v1011_v42 }
 0x1cf   : > { %v1948_v2 = vpop.eup %1947  ;;  %1185 = vmatpush1.bf16.msra.mxu1 %v1013_v0  ;;  %1115 = vmatprep.subr.bf16.mxu0 %v1008_v57 }
 0x1d0   : > { %v1950_v6 = vpop.eup %1949  ;;  %1186 = vmatprep.subr.bf16.mxu1 %v1010_v60  ;;  %v1007_v7 = vpack.c.bf16 %v1944_v56, %v1948_v2 }
 0x1d1   : > { %v1952_v9 = vpop.eup %1951  ;;  %v1009_v10 = vpack.c.bf16 %v1946_v58, %v1950_v6 }
 0x1d2   : > { %v1954_v13 = vpop.eup %1953  ;;  %1116 = vmatpush1.bf16.msra.mxu0 %v1007_v7 }
 0x1d3   : > { %v1956_v15 = vpop.eup %1955  ;;  %1187 = vmatpush1.bf16.msra.mxu1 %v1009_v10  ;;  %1117 = vmatprep.subr.bf16.mxu0 %v1004_v11 }
 0x1d4   : > { %v1958_v16 = vpop.eup %1957  ;;  %1188 = vmatprep.subr.bf16.mxu1 %v1006_v14  ;;  %v1003_v61 = vpack.c.bf16 %v1952_v9, %v1956_v15 }
 0x1d5   : > { %v1005_v17 = vpack.c.bf16 %v1954_v13, %v1958_v16 }
 0x1d6   : > { %1118 = vmatpush1.bf16.msra.mxu0 %v1003_v61 }
 0x1d7   : > { %1189 = vmatpush1.bf16.msra.mxu1 %v1005_v17 }
 0x1d9   : > { %1785 = vmatmul.mubr.msk.bf16.vlgmr.msra.gmra.mxu0 %vm800_vm1, %v1839_v19 }
 0x1da   : > { %1790 = vmatmul.mubr.msk.bf16.vlgmr.msra.gmra.mxu1 %vm800_vm1, %v1839_v19  ;;  %1145 = vmatprep.mubr.bf16.mxu0 %v2079_v3 }
 0x1db   : > { %1216 = vmatprep.mubr.bf16.mxu1 %v2079_v3 }
 0x1e1   : > { %1786 = vmatmul.mubr.msk.bf16.gmra.mxu0 %vm800_vm1, %v1840_v18 }
 0x1e2   : > { %1791 = vmatmul.mubr.msk.bf16.gmra.mxu1 %vm800_vm1, %v1840_v18  ;;  %1155 = vmatprep.mubr.bf16.mxu0 %v2079_v3 }
 0x1e3   : > { %1226 = vmatprep.mubr.bf16.mxu1 %v2079_v3 }
 0x1e9   : > { %1787 = vmatmul.mubr.msk.bf16.gmra.mxu0 %vm800_vm1, %v1841_v26 }
 0x1ea   : > { %1792 = vmatmul.mubr.msk.bf16.gmra.mxu1 %vm800_vm1, %v1841_v26  ;;  %1165 = vmatprep.mubr.bf16.mxu0 %v2079_v3 }
 0x1eb   : > { %1236 = vmatprep.mubr.bf16.mxu1 %v2079_v3 }
 0x1f1   : > { %1788 = vmatmul.mubr.msk.bf16.gmra.mxu0 %vm800_vm1, %v1842_v20 }
 0x1f2   : > { %1793 = vmatmul.mubr.msk.bf16.gmra.mxu1 %vm800_vm1, %v1842_v20  ;;  %1412 = vmatprep.mubr.bf16.mxu0 %v2079_v3 }
 0x1f3   : > { %1483 = vmatprep.mubr.bf16.mxu1 %v2079_v3 }
 0x299   : > { %v2540_v12 = vpop.f32.mrf.mxu0 }
 0x29a   : > { %v2544_v37 = vpop.f32.mrf.mxu1 }
 0x29b   : > { %v1139_v24 = vpop.f32.mrf.mxu0 }
 0x29c   : > { %v1210_v25 = vpop.f32.mrf.mxu1  ;;  %v1140_v27 = vadd.f32 %v1139_v24, %v2558_v28 }
 0x29d   : > { %v2546_v34 = vpop.f32.mrf.mxu0  ;;  %v1211_v38 = vadd.f32 %v1210_v25, %v2558_v28 }
 0x29e   : > { %v2550_v44 = vpop.f32.mrf.mxu1  ;;  %1959 = vtanh.f32 %v1140_v27 }
 0x29f   : > { %v1143_v45 = vpop.f32.mrf.mxu0  ;;  %1961 = vtanh.f32 %v1211_v38 }
 0x2a0   : > { %v1214_v31 = vpop.f32.mrf.mxu1  ;;  %v1144_v41 = vadd.f32 %v1143_v45, %v2561_v43 }
 0x2a1   : > { %v2554_v47 = vpop.f32.mrf.mxu0  ;;  %v1215_v29 = vadd.f32 %v1214_v31, %v2561_v43 }
 0x2a2   : > { %v2556_v50 = vpop.f32.mrf.mxu1  ;;  %1963 = vtanh.f32 %v1144_v41  ;;  %v1142_v41 = vadd.f32 %v2546_v34, %v2561_v43 }
 0x2a3   : > { %v1149_v46 = vpop.f32.mrf.mxu0  ;;  %1965 = vtanh.f32 %v1215_v29 }
 0x2a4   : > { %v1220_v49 = vpop.f32.mrf.mxu1  ;;  %v1150_v63 = vadd.f32 %v1149_v46, %v2548_v30 }
 0x2a5   : > { %v1151_v52 = vpop.f32.mrf.mxu0  ;;  %v1221_v53 = vadd.f32 %v1220_v49, %v2548_v30  ;;  %v1148_v49 = vadd.f32 %v2554_v47, %v2548_v30  ;;  %v1138_v47 = vadd.f32 %v2540_v12, %v2558_v28 }
 0x2a6   : > { %v1222_v1 = vpop.f32.mrf.mxu1  ;;  %1967 = vtanh.f32 %v1150_v63  ;;  %v1152_v45 = vadd.f32 %v1151_v52, %v2552_v8 }
 0x2a7   : > { %v1153_v21 = vpop.f32.mrf.mxu0  ;;  %1969 = vtanh.f32 %v1221_v53  ;;  %v1223_v31 = vadd.f32 %v1222_v1, %v2552_v8 }
 0x2a8   : > { %v1224_v23 = vpop.f32.mrf.mxu1  ;;  %v1154_v4 = vadd.f32 %v1153_v21, %v2552_v8 }
 0x2a9   : > { %v1157_v51 = vpop.f32.mrf.mxu0  ;;  %v1225_v5 = vadd.f32 %v1224_v23, %v2552_v8  ;;  %v1213_v8 = vadd.f32 %v2550_v44, %v2561_v43 }
 0x2aa   : > { %v1228_v33 = vpop.f32.mrf.mxu1  ;;  %1971 = vtanh.f32 %v1154_v4  ;;  %v1158_v18 = vadd.f32 %v1157_v51, %v2538_v22 }
 0x2ab   : > { %v1159_v35 = vpop.f32.mrf.mxu0  ;;  %1973 = vtanh.f32 %v1225_v5  ;;  %v2579_v16 = vpop.eup %1959  ;;  %v1229_v24 = vadd.f32 %v1228_v33, %v2538_v22 }
 0x2ac   : > { %v1230_v54 = vpop.f32.mrf.mxu1  ;;  %v1160_v55 = vadd.f32 %v1159_v35, %v2538_v22  ;;  %v2582_v19 = vpop.eup %1961 }
 0x2ad   : > { %v1161_v32 = vpop.f32.mrf.mxu0  ;;  %v1231_v9 = vadd.f32 %v1230_v54, %v2538_v22  ;;  %v1219_v22 = vadd.f32 %v2556_v50, %v2548_v30  ;;  %v1209_v30 = vadd.f32 %v2544_v37, %v2558_v28 }
 0x2ae   : > { %v1232_v62 = vpop.f32.mrf.mxu1  ;;  %1975 = vtanh.f32 %v1160_v55  ;;  %v1162_v13 = vadd.f32 %v1161_v32, %v2542_v36 }
 0x2af   : > { %v1163_v42 = vpop.f32.mrf.mxu0  ;;  %v1233_v61 = vadd.f32 %v1232_v62, %v2542_v36  ;;  %v2585_v20 = vpop.eup %1963 }
 0x2b0   : > { %v1164_v56 = vadd.f32 %v1163_v42, %v2542_v36  ;;  %v1234_v0 = vpop.f32.mrf.mxu1 }
 0x2b1   : > { %v1235_v57 = vadd.f32 %v1234_v0, %v2542_v36  ;;  %v1167_v58 = vpop.f32.mrf.mxu0 }
 0x2b2   : > { %1977 = vtanh.f32 %v1164_v56  ;;  %v1168_v60 = vadd.f32 %v1167_v58, %v2536_v59  ;;  %v1238_v2 = vpop.f32.mrf.mxu1 }
 0x2b3   : > { %1979 = vtanh.f32 %v1235_v57  ;;  %v1239_v6 = vadd.f32 %v1238_v2, %v2536_v59  ;;  %v1169_v7 = vpop.f32.mrf.mxu0 }
 0x2b4   : > { %1981 = vtanh.f32 %v1168_v60  ;;  %v1170_v10 = vadd.f32 %v1169_v7, %v2536_v59  ;;  %v1240_v11 = vpop.f32.mrf.mxu1  ;;  %v1281_v7 = vpack.c.bf16 %v2585_v20, %v2579_v16  ;;  %v1844_v16 = vld [vmem:[%s2738_s7 + $0x8] sm:$0xff]  }
 0x2b5   : > { %1983 = vtanh.f32 %v1239_v6  ;;  %v1241_v14 = vadd.f32 %v1240_v11, %v2536_v59  ;;  %v1171_v15 = vpop.f32.mrf.mxu0  ;;  %v2588_v59 = vpop.eup %1965 }
 0x2b6   : > { %1985 = vtanh.f32 %v1170_v10  ;;  %v1242_v17 = vpop.f32.mrf.mxu1  ;;  %v1968_v36 = vpop.eup %1967  ;;  %v1283_v10 = vpack.c.bf16 %v2588_v59, %v2582_v19  ;;  %v1846_v19 = vld [vmem:[%s2738_s7 + $0x18] ss:$0 sps:$4 sm:$0x11]  }
 0x2b7   : > { %1987 = vtanh.f32 %v1241_v14  ;;  %v1172_v26 = vpop.f32.mrf.mxu0  ;;  %v1970_v46 = vpop.eup %1969  ;;  %v1845_v17 = vld [vmem:[%s2738_s7 + $0x10] sm:$0xff]  }
 0x2b8   : > { %1989 = vtanh.f32 %v1231_v9  ;;  %v1243_v25 = vpop.f32.mrf.mxu1  ;;  %v1972_v27 = vpop.eup %1971 }
 0x2b9   : > { %1991 = vtanh.f32 %v1162_v13  ;;  %v1974_v38 = vpop.eup %1973  ;;  %v1285_v42 = vpack.c.bf16 %v1972_v27, %v1968_v36  ;;  %v2642_v26 = vpop.permute.xlu0 %1325 }
 0x2ba   : > { %1993 = vtanh.f32 %v1233_v61  ;;  %v1287_v0 = vpack.c.bf16 %v1974_v38, %v1970_v46  ;;  %v1843_v61 = vld [vmem:[%s2738_s7] sm:$0xff]  }
 0x2bb   : > { %1995 = vtanh.f32 %v1158_v18  ;;  %v1976_v52 = vpop.eup %1975  ;;  %v2640_v18 = vpop.permute.xlu1 %1335 }
 0x2bc   : > { %1997 = vtanh.f32 %v1229_v24 }
 0x2bd   : > { %1999 = vtanh.f32 %v1152_v45 }
 0x2be   : > { %2001 = vtanh.f32 %v1223_v31  ;;  %v2652_v31 = vpop.permute.xlu0 %1315 }
 0x2bf   : > { %v1978_v1 = vpop.eup %1977  ;;  %2003 = vtanh.f32 %v1148_v49  ;;  %v2646_v24 = vpop.permute.xlu1 %1330 }
 0x2c0   : > { %v1980_v21 = vpop.eup %1979  ;;  %2005 = vtanh.f32 %v1219_v22  ;;  %v1289_v37 = vpack.c.bf16 %v1978_v1, %v1976_v52 }
 0x2c1   : > { %v1982_v50 = vpop.eup %1981  ;;  %2007 = vtanh.f32 %v1142_v41 }
 0x2c2   : > { %v1984_v29 = vpop.eup %1983  ;;  %2009 = vtanh.f32 %v1213_v8  ;;  %v1292_v34 = vpack.c.bf16 %v1982_v50, %v1982_v50  ;;  %v2662_v52 = vpop.permute.xlu0 %1305 }
 0x2c3   : > { %v1986_v23 = vpop.eup %1985  ;;  %2011 = vtanh.f32 %v1138_v47  ;;  %v1294_v63 = vpack.c.bf16 %v1984_v29, %v1984_v29 }
 0x2c4   : > { %v1988_v44 = vpop.eup %1987  ;;  %2013 = vtanh.f32 %v1209_v30  ;;  %v1293_v43 = vpack.c.bf16 %v1986_v23, %v1986_v23  ;;  %v1369_v33 = vsel %vm813_vm0, %v1292_v34, 0 }
 0x2c5   : > { %v1990_v51 = vpop.eup %1989  ;;  %v1295_v53 = vpack.c.bf16 %v1988_v44, %v1988_v44  ;;  %v1375_v4 = vsel %vm813_vm0, %v1294_v63, 0 }
 0x2c6   : > { %v1992_v12 = vpop.eup %1991  ;;  %1798 = vmatprep.subr.msk.bf16.mxu0 %vm813_vm0, %v1293_v43  ;;  %v1291_v35 = vpack.c.bf16 %v1980_v21, %v1990_v51 }
 0x2c7   : > { %v1994_v28 = vpop.eup %1993  ;;  %1803 = vmatprep.subr.msk.bf16.mxu1 %vm813_vm0, %v1295_v53  ;;  %1389 = vmatpush1.bf16.msra.mxu0 %v1369_v33 }
 0x2c8   : > { %v1996_v5 = vpop.eup %1995  ;;  %1460 = vmatpush1.bf16.msra.mxu1 %v1375_v4  ;;  %1390 = vmatprep.subr.bf16.mxu0 %v1289_v37 }
 0x2c9   : > { %v1998_v54 = vpop.eup %1997  ;;  %1461 = vmatprep.subr.bf16.mxu1 %v1291_v35  ;;  %v1288_v55 = vpack.c.bf16 %v1992_v12, %v1996_v5 }
 0x2ca   : > { %v2000_v32 = vpop.eup %1999  ;;  %v1290_v62 = vpack.c.bf16 %v1994_v28, %v1998_v54 }
 0x2cb   : > { %v2002_v56 = vpop.eup %2001  ;;  %1391 = vmatpush1.bf16.msra.mxu0 %v1288_v55 }
 0x2cc   : > { %v2004_v57 = vpop.eup %2003  ;;  %1462 = vmatpush1.bf16.msra.mxu1 %v1290_v62  ;;  %1392 = vmatprep.subr.bf16.mxu0 %v1285_v42 }
 0x2cd   : > { %v2006_v58 = vpop.eup %2005  ;;  %1463 = vmatprep.subr.bf16.mxu1 %v1287_v0  ;;  %v1284_v60 = vpack.c.bf16 %v2000_v32, %v2004_v57 }
 0x2ce   : > { %v2008_v2 = vpop.eup %2007  ;;  %v1286_v6 = vpack.c.bf16 %v2002_v56, %v2006_v58 }
 0x2cf   : > { %v2010_v9 = vpop.eup %2009  ;;  %1393 = vmatpush1.bf16.msra.mxu0 %v1284_v60 }
 0x2d0   : > { %v2012_v11 = vpop.eup %2011  ;;  %1464 = vmatpush1.bf16.msra.mxu1 %v1286_v6  ;;  %1394 = vmatprep.subr.bf16.mxu0 %v1281_v7 }
 0x2d1   : > { %v2014_v13 = vpop.eup %2013  ;;  %1465 = vmatprep.subr.bf16.mxu1 %v1283_v10  ;;  %v1280_v14 = vpack.c.bf16 %v2008_v2, %v2012_v11 }
 0x2d2   : > { %v1282_v15 = vpack.c.bf16 %v2010_v9, %v2014_v13 }
 0x2d3   : > { %1395 = vmatpush1.bf16.msra.mxu0 %v1280_v14 }
 0x2d4   : > { %1466 = vmatpush1.bf16.msra.mxu1 %v1282_v15 }
 0x2d6   : > { %1799 = vmatmul.mubr.msk.bf16.vlgmr.msra.gmra.mxu0 %vm800_vm1, %v1843_v61 }
 0x2d7   : > { %1804 = vmatmul.mubr.msk.bf16.vlgmr.msra.gmra.mxu1 %vm800_vm1, %v1843_v61  ;;  %1422 = vmatprep.mubr.bf16.mxu0 %v2079_v3 }
 0x2d8   : > { %1493 = vmatprep.mubr.bf16.mxu1 %v2079_v3 }
 0x2de   : > { %1800 = vmatmul.mubr.msk.bf16.gmra.mxu0 %vm800_vm1, %v1844_v16 }
 0x2df   : > { %1805 = vmatmul.mubr.msk.bf16.gmra.mxu1 %vm800_vm1, %v1844_v16  ;;  %1432 = vmatprep.mubr.bf16.mxu0 %v2079_v3 }
 0x2e0   : > { %1503 = vmatprep.mubr.bf16.mxu1 %v2079_v3 }
 0x2e6   : > { %1801 = vmatmul.mubr.msk.bf16.gmra.mxu0 %vm800_vm1, %v1845_v17 }
 0x2e7   : > { %1806 = vmatmul.mubr.msk.bf16.gmra.mxu1 %vm800_vm1, %v1845_v17  ;;  %1442 = vmatprep.mubr.bf16.mxu0 %v2079_v3 }
 0x2e8   : > { %1513 = vmatprep.mubr.bf16.mxu1 %v2079_v3 }
 0x2ee   : > { %1802 = vmatmul.mubr.msk.bf16.gmra.mxu0 %vm800_vm1, %v1846_v19 }
 0x2ef   : > { %1807 = vmatmul.mubr.msk.bf16.gmra.mxu1 %vm800_vm1, %v1846_v19  ;;  %1624 = vmatprep.mubr.bf16.mxu0 %v2079_v3 }
 0x2f0   : > { %1665 = vmatprep.mubr.bf16.mxu1 %v2079_v3  ;;  %v2656_v3 = vpop.permute.xlu1 %1320 }
 0x2f4   : > { %v2665_v21 = vpop.permute.xlu1 %1310 }
 0x396   : > { %v2644_v20 = vpop.f32.mrf.mxu0 }
 0x397   : > { %v2648_v25 = vpop.f32.mrf.mxu1 }
 0x398   : > { %v1416_v59 = vpop.f32.mrf.mxu0 }
 0x399   : > { %v1487_v45 = vpop.f32.mrf.mxu1  ;;  %v1417_v1 = vadd.f32 %v1416_v59, %v2662_v52 }
 0x39a   : > { %v2650_v36 = vpop.f32.mrf.mxu0  ;;  %v1488_v30 = vadd.f32 %v1487_v45, %v2662_v52 }
 0x39b   : > { %v2654_v46 = vpop.f32.mrf.mxu1  ;;  %2015 = vtanh.f32 %v1417_v1 }
 0x39c   : > { %v1420_v49 = vpop.f32.mrf.mxu0  ;;  %2017 = vtanh.f32 %v1488_v30  ;;  %v1419_v30 = vadd.f32 %v2650_v36, %v2665_v21 }
 0x39d   : > { %v1491_v27 = vpop.f32.mrf.mxu1  ;;  %v1421_v29 = vadd.f32 %v1420_v49, %v2665_v21 }
 0x39e   : > { %v2658_v22 = vpop.f32.mrf.mxu0  ;;  %v1492_v23 = vadd.f32 %v1491_v27, %v2665_v21 }
 0x39f   : > { %v2660_v38 = vpop.f32.mrf.mxu1  ;;  %2019 = vtanh.f32 %v1421_v29 }
 0x3a0   : > { %v1426_v41 = vpop.f32.mrf.mxu0  ;;  %2021 = vtanh.f32 %v1492_v23 }
 0x3a1   : > { %v1497_v8 = vpop.f32.mrf.mxu1  ;;  %v1427_v44 = vadd.f32 %v1426_v41, %v2652_v31  ;;  %v1425_v41 = vadd.f32 %v2658_v22, %v2652_v31  ;;  %v1415_v22 = vadd.f32 %v2644_v20, %v2662_v52 }
 0x3a2   : > { %v1428_v47 = vpop.f32.mrf.mxu0  ;;  %v1498_v51 = vadd.f32 %v1497_v8, %v2652_v31 }
 0x3a3   : > { %v1499_v50 = vpop.f32.mrf.mxu1  ;;  %2023 = vtanh.f32 %v1427_v44  ;;  %v1429_v45 = vadd.f32 %v1428_v47, %v2656_v3 }
 0x3a4   : > { %v1430_v34 = vpop.f32.mrf.mxu0  ;;  %2025 = vtanh.f32 %v1498_v51  ;;  %v1500_v49 = vadd.f32 %v1499_v50, %v2656_v3 }
 0x3a5   : > { %v1501_v63 = vpop.f32.mrf.mxu1  ;;  %v1431_v12 = vadd.f32 %v1430_v34, %v2656_v3 }
 0x3a6   : > { %v1434_v43 = vpop.f32.mrf.mxu0  ;;  %v1502_v37 = vadd.f32 %v1501_v63, %v2656_v3  ;;  %v1490_v3 = vadd.f32 %v2654_v46, %v2665_v21 }
 0x3a7   : > { %v1505_v53 = vpop.f32.mrf.mxu1  ;;  %2027 = vtanh.f32 %v1431_v12  ;;  %v1435_v61 = vadd.f32 %v1434_v43, %v2642_v26 }
 0x3a8   : > { %v1436_v33 = vpop.f32.mrf.mxu0  ;;  %2029 = vtanh.f32 %v1502_v37  ;;  %v2683_v11 = vpop.eup %2015  ;;  %v1506_v19 = vadd.f32 %v1505_v53, %v2642_v26 }
 0x3a9   : > { %v1507_v28 = vpop.f32.mrf.mxu1  ;;  %v1437_v4 = vadd.f32 %v1436_v33, %v2642_v26  ;;  %v2686_v15 = vpop.eup %2017 }
 0x3aa   : > { %v1438_v35 = vpop.f32.mrf.mxu0  ;;  %v1508_v60 = vadd.f32 %v1507_v28, %v2642_v26  ;;  %v1496_v26 = vadd.f32 %v2660_v38, %v2652_v31  ;;  %v1486_v31 = vadd.f32 %v2648_v25, %v2662_v52 }
 0x3ab   : > { %v1509_v5 = vpop.f32.mrf.mxu1  ;;  %2031 = vtanh.f32 %v1437_v4  ;;  %v1439_v7 = vadd.f32 %v1438_v35, %v2646_v24 }
 0x3ac   : > { %v1440_v54 = vpop.f32.mrf.mxu0  ;;  %v1510_v13 = vadd.f32 %v1509_v5, %v2646_v24  ;;  %v2689_v17 = vpop.eup %2019 }
 0x3ad   : > { %v1441_v55 = vadd.f32 %v1440_v54, %v2646_v24  ;;  %v1511_v32 = vpop.f32.mrf.mxu1 }
 0x3ae   : > { %v1512_v62 = vadd.f32 %v1511_v32, %v2646_v24  ;;  %v1444_v42 = vpop.f32.mrf.mxu0 }
 0x3af   : > { %2033 = vtanh.f32 %v1441_v55  ;;  %v1445_v56 = vadd.f32 %v1444_v42, %v2640_v18  ;;  %v1515_v0 = vpop.f32.mrf.mxu1 }
 0x3b0   : > { %2035 = vtanh.f32 %v1512_v62  ;;  %v1516_v57 = vadd.f32 %v1515_v0, %v2640_v18  ;;  %v1446_v58 = vpop.f32.mrf.mxu0 }
 0x3b1   : > { %2037 = vtanh.f32 %v1445_v56  ;;  %v1447_v2 = vadd.f32 %v1446_v58, %v2640_v18  ;;  %v1517_v6 = vpop.f32.mrf.mxu1 }
 0x3b2   : > { %2039 = vtanh.f32 %v1516_v57  ;;  %v1518_v9 = vadd.f32 %v1517_v6, %v2640_v18  ;;  %v1448_v10 = vpop.f32.mrf.mxu0  ;;  %v2692_v18 = vpop.eup %2021  ;;  %v1552_v57 = vpack.c.bf16 %v2689_v17, %v2683_v11  ;;  %v2081_v11 = vmov 1966171168  }
 0x3b3   : > { %2041 = vtanh.f32 %v1447_v2  ;;  %v1519_v14 = vpop.f32.mrf.mxu1  ;;  %v2024_v24 = vpop.eup %2023  ;;  %v1550_v10 = vld [vmem:[%s2740_s9] sm:$0x1] }
 0x3b4   : > { %2043 = vtanh.f32 %v1518_v9  ;;  %v1449_v16 = vpop.f32.mrf.mxu0  ;;  %v2026_v27 = vpop.eup %2025 }
 0x3b5   : > { %2045 = vtanh.f32 %v1508_v60  ;;  %v1520_v59 = vpop.f32.mrf.mxu1  ;;  %v2028_v8 = vpop.eup %2027  ;;  %v1554_v60 = vpack.c.bf16 %v2692_v18, %v2686_v15 }
 0x3b6   : > { %2047 = vtanh.f32 %v1439_v7  ;;  %v2030_v1 = vpop.eup %2029  ;;  %v1556_v5 = vpack.c.bf16 %v2028_v8, %v2024_v24  ;;  %v1571_v14 = vpop.permute.xlu0 %1570 }
 0x3b7   : > { %2049 = vtanh.f32 %v1510_v13  ;;  %v1558_v55 = vpack.c.bf16 %v2030_v1, %v2026_v27  ;;  %v1681_v13 = vunpack.c.l.s4 %v2081_v11  ;;  %v1576_v16 = vrot.slane %v1571_v14, %v2284_v48 }
 0x3b8   : > { %2051 = vtanh.f32 %v1435_v61  ;;  %v2032_v47 = vpop.eup %2031 }
 0x3b9   : > { %2053 = vtanh.f32 %v1506_v19  ;;  %v1682_v15 = vunpack.c.0.s8 %v1681_v13 }
 0x3ba   : > { %2055 = vtanh.f32 %v1429_v45 }
 0x3bb   : > { %2057 = vtanh.f32 %v1500_v49  ;;  %v1685_v45 = vsub.s32 %v1682_v15, %v2272_v40 }
 0x3bc   : > { %v2034_v50 = vpop.eup %2033  ;;  %2059 = vtanh.f32 %v1425_v41 }
 0x3bd   : > { %v2036_v29 = vpop.eup %2035  ;;  %2061 = vtanh.f32 %v1496_v26  ;;  %v1560_v25 = vpack.c.bf16 %v2034_v50, %v2032_v47 }
 0x3be   : > { %v2038_v38 = vpop.eup %2037  ;;  %2063 = vtanh.f32 %v1419_v30 }
 0x3bf   : > { %v2040_v34 = vpop.eup %2039  ;;  %2065 = vtanh.f32 %v1490_v3  ;;  %v1563_v36 = vpack.c.bf16 %v2038_v38, %v2038_v38 }
 0x3c0   : > { %v2042_v23 = vpop.eup %2041  ;;  %2067 = vtanh.f32 %v1415_v22  ;;  %v1565_v63 = vpack.c.bf16 %v2040_v34, %v2040_v34 }
 0x3c1   : > { %v2044_v46 = vpop.eup %2043  ;;  %2069 = vtanh.f32 %v1486_v31  ;;  %v1564_v21 = vpack.c.bf16 %v2042_v23, %v2042_v23  ;;  %v1581_v51 = vsel %vm813_vm0, %v1563_v36, 0 }
 0x3c2   : > { %v2046_v44 = vpop.eup %2045  ;;  %v1566_v43 = vpack.c.bf16 %v2044_v46, %v2044_v46  ;;  %v1587_v53 = vsel %vm813_vm0, %v1565_v63, 0 }
 0x3c3   : > { %v2048_v20 = vpop.eup %2047  ;;  %1808 = vmatprep.subr.msk.bf16.mxu0 %vm813_vm0, %v1564_v21  ;;  %v1562_v12 = vpack.c.bf16 %v2036_v29, %v2046_v44 }
 0x3c4   : > { %v2050_v52 = vpop.eup %2049  ;;  %1810 = vmatprep.subr.msk.bf16.mxu1 %vm813_vm0, %v1566_v43  ;;  %1601 = vmatpush1.bf16.msra.mxu0 %v1581_v51 }
 0x3c5   : > { %v2052_v33 = vpop.eup %2051  ;;  %1642 = vmatpush1.bf16.msra.mxu1 %v1587_v53  ;;  %1602 = vmatprep.subr.bf16.mxu0 %v1560_v25 }
 0x3c6   : > { %v2054_v37 = vpop.eup %2053  ;;  %1643 = vmatprep.subr.bf16.mxu1 %v1562_v12  ;;  %v1559_v28 = vpack.c.bf16 %v2048_v20, %v2052_v33 }
 0x3c7   : > { %v2056_v4 = vpop.eup %2055  ;;  %v1561_v35 = vpack.c.bf16 %v2050_v52, %v2054_v37 }
 0x3c8   : > { %v2058_v54 = vpop.eup %2057  ;;  %1603 = vmatpush1.bf16.msra.mxu0 %v1559_v28 }
 0x3c9   : > { %v2060_v32 = vpop.eup %2059  ;;  %1644 = vmatpush1.bf16.msra.mxu1 %v1561_v35  ;;  %1604 = vmatprep.subr.bf16.mxu0 %v1556_v5 }
 0x3ca   : > { %v2062_v62 = vpop.eup %2061  ;;  %1645 = vmatprep.subr.bf16.mxu1 %v1558_v55  ;;  %v1555_v42 = vpack.c.bf16 %v2056_v4, %v2060_v32 }
 0x3cb   : > { %v2064_v56 = vpop.eup %2063  ;;  %v1557_v0 = vpack.c.bf16 %v2058_v54, %v2062_v62 }
 0x3cc   : > { %v2066_v58 = vpop.eup %2065  ;;  %1605 = vmatpush1.bf16.msra.mxu0 %v1555_v42 }
 0x3cd   : > { %v2068_v2 = vpop.eup %2067  ;;  %1646 = vmatpush1.bf16.msra.mxu1 %v1557_v0  ;;  %1606 = vmatprep.subr.bf16.mxu0 %v1552_v57 }
 0x3ce   : > { %v2070_v6 = vpop.eup %2069  ;;  %1647 = vmatprep.subr.bf16.mxu1 %v1554_v60  ;;  %v1551_v7 = vpack.c.bf16 %v2064_v56, %v2068_v2 }
 0x3cf   : > { %v1553_v9 = vpack.c.bf16 %v2066_v58, %v2070_v6 }
 0x3d0   : > { %1607 = vmatpush1.bf16.msra.mxu0 %v1551_v7 }
 0x3d1   : > { %1648 = vmatpush1.bf16.msra.mxu1 %v1553_v9 }
 0x3d3   : > { %1809 = vmatmul.mubr.msk.bf16.vlgmr.msra.gmra.mxu0 %vm800_vm1, %v1550_v10 }
 0x3d4   : > { %1811 = vmatmul.mubr.msk.bf16.vlgmr.msra.gmra.mxu1 %vm800_vm1, %v1550_v10 }
 0x493   : > { %v1626_v61 = vpop.f32.mrf.mxu0 }
 0x494   : > { %v1667_v17 = vpop.f32.mrf.mxu1  ;;  %v1627_v59 = vadd.f32 %v1626_v61, %v1576_v16 }
 0x495   : > { %v1628_v19 = vpop.f32.mrf.mxu0  ;;  %v1668_v49 = vadd.f32 %v1667_v17, %v1576_v16 }
 0x496   : > { %v1629_v18 = vadd.f32 %v1628_v19, %v1576_v16  ;;  %v1669_v24 = vpop.f32.mrf.mxu1 }
 0x497   : > { %v1670_v27 = vadd.f32 %v1669_v24, %v1576_v16  ;;  %v1630_v41 = vpop.f32.mrf.mxu0 }
 0x498   : > { %v1678_v8 = vcombine.low %v1627_v59, %v1629_v18  ;;  %v1671_v26 = vpop.f32.mrf.mxu1 }
 0x499   : > { %v1679_v1 = vcombine.low %v1668_v49, %v1670_v27  ;;  %v1631_v30 = vpop.f32.mrf.mxu0 }
 0x49a   : > { %v1686_v47 = vrot.slane %v1678_v8, %v1685_v45  ;;  %v1672_v3 = vpop.f32.mrf.mxu1 }
 0x49b   : > { %v1693_v50 = vrot.slane %v1679_v1, %v1685_v45 }
 0x49d   : > { %v1694_v22 = vcombine.low %v1686_v47, %v1693_v50 }
 0x49f   : > { %v1701_v48 = vrot.slane %v1694_v22, %v1685_v45 }
 0x4a1   : > { %1707 = vst.msk [vmem:[%s388_s13] sm:$0xf] %vm1705_vm2, %v1701_v48 }
 0x4a2 PF: > { %s23_s19 = sadd.s32 1, %s2077_s19  }
 0x4a3   : > { %p20_p4 = scmp.ge.s32.totalorder %s23_s19, 4  }
 0x4a5   :  { %22 = sbr.rel (!%p20_p4) target bundleno = 3 (0x3), region = 94 }

</bundles_post_ra>
